<compile_context>
chip_gen: v5e
topology: v5e:2x2
jax: 0.10.0
libtpu: 0.0.40
codegen_flags: <defaults>
</compile_context>

<pallas_src>
import functools
import math

import jax
import jax.numpy as jnp
from jax.experimental import pallas as pl
from jax.experimental.pallas import tpu as pltpu

Z_dim = 100
H_dim = 128
IMG_SHAPE = (1, 16, 16)
X_dim = IMG_SHAPE[0] * IMG_SHAPE[1] * IMG_SHAPE[2]  # 256

Z_PAD = 128            # Z_dim zero-padded to a full 128-lane width
DEFAULT_TILE_B = 1024  # batch rows per grid step (multiple of 8, v7x-VMEM safe)


def _round_up(x, m):
    return (x + m - 1) // m * m


def gen_kernel(z_ref, w1_ref, b1_ref, w2_ref, b2_ref, o_ref):
    # Hidden layer: Linear(Z_pad -> H) + ReLU. bf16 operands, f32 MXU accumulate.
    h = jnp.dot(z_ref[...], w1_ref[...], preferred_element_type=jnp.float32)
    h = jnp.maximum(h + b1_ref[...], 0.0)

    # Output layer: Linear(H -> X) + Sigmoid.
    y = jnp.dot(h.astype(jnp.bfloat16), w2_ref[...],
                preferred_element_type=jnp.float32)
    y = y + b2_ref[...]

    # sigmoid(y) = 1 / (1 + exp(-y)); exp + approx reciprocal both run on the EUP.
    o_ref[...] = pl.reciprocal(1.0 + jnp.exp(-y), approx=True).astype(o_ref.dtype)


@functools.partial(jax.jit, static_argnames=("tile_b", "out_dtype"))
def gen_forward(z, w1, b1, w2, b2, tile_b=DEFAULT_TILE_B, out_dtype=jnp.float32):
    """Fused forward: sigmoid(relu(z @ w1 + b1) @ w2 + b2)."""
    B = z.shape[0]
    assert z.shape == (B, Z_dim)
    assert w1.shape == (Z_dim, H_dim) and b1.shape == (1, H_dim)
    assert w2.shape == (H_dim, X_dim) and b2.shape == (1, X_dim)

    # --- one-time host-side prep (outside the kernel) ------------------------
    # Zero-pad the contraction dim 100 -> 128 and cast matmul inputs to bf16.
    # Zeros don't change the result; biases stay f32.
    z_p = jnp.pad(z, ((0, 0), (0, Z_PAD - Z_dim))).astype(jnp.bfloat16)
    w1_p = jnp.pad(w1, ((0, Z_PAD - Z_dim), (0, 0))).astype(jnp.bfloat16)
    w2_b = w2.astype(jnp.bfloat16)

    # Batch tile: multiple of 8 (sublane), never larger than needed.
    tile_b = min(tile_b, _round_up(B, 8))
    grid = (pl.cdiv(B, tile_b),)

    return pl.pallas_call(
        gen_kernel,
        out_shape=jax.ShapeDtypeStruct((B, X_dim), out_dtype),
        grid_spec=pltpu.PrefetchScalarGridSpec(
            num_scalar_prefetch=0,
            grid=grid,
            in_specs=[
                pl.BlockSpec((tile_b, Z_PAD), lambda i: (i, 0)),  # z: streamed per tile
                pl.BlockSpec((Z_PAD, H_dim), lambda i: (0, 0)),   # w1: VMEM-resident
                pl.BlockSpec((1, H_dim), lambda i: (0, 0)),       # b1: VMEM-resident
                pl.BlockSpec((H_dim, X_dim), lambda i: (0, 0)),   # w2: VMEM-resident
                pl.BlockSpec((1, X_dim), lambda i: (0, 0)),       # b2: VMEM-resident
            ],
            out_specs=pl.BlockSpec((tile_b, X_dim), lambda i: (i, 0)),
        ),
        compiler_params=pltpu.CompilerParams(
            # Batch tiles are independent -> shard across v7x's 2 TCs (harmless
            # on single-TC v5e/v6e).
            dimension_semantics=("parallel",),
        ),
    )(z_p, w1_p, b1, w2_b, b2)


def init_params(key):
    """Deterministic init matching PyTorch nn.Linear default:
    W, b ~ U(-1/sqrt(fan_in), 1/sqrt(fan_in))."""
    k1, k2, k3, k4 = jax.random.split(key, 4)
    bnd1 = 1.0 / math.sqrt(Z_dim)
    bnd2 = 1.0 / math.sqrt(H_dim)
    w1 = jax.random.uniform(k1, (Z_dim, H_dim), jnp.float32, -bnd1, bnd1)
    b1 = jax.random.uniform(k2, (1, H_dim), jnp.float32, -bnd1, bnd1)
    w2 = jax.random.uniform(k3, (H_dim, X_dim), jnp.float32, -bnd2, bnd2)
    b2 = jax.random.uniform(k4, (1, X_dim), jnp.float32, -bnd2, bnd2)
    return w1, b1, w2, b2


if __name__ == "__main__":
    key = jax.random.PRNGKey(0)
    k_param, k_z = jax.random.split(key)

    w1, b1, w2, b2 = init_params(k_param)

    B = 16  # small demo batch; tile_b auto-shrinks to 16 (grid of 1)
    z = jax.random.normal(k_z, (B, Z_dim), dtype=jnp.float32)

    out = gen_forward(z, w1, b1, w2, b2)
    out = jax.block_until_ready(out)

    # Plain-JAX f32 reference (same math as the PyTorch module).
    h_ref = jnp.maximum(z @ w1 + b1, 0.0)
    ref = jax.nn.sigmoid(h_ref @ w2 + b2)

    assert out.shape == (B, X_dim)
    # bf16 matmul inputs + approx reciprocal -> loosen tolerance (sigmoid
    # output is bounded in [0, 1], so absolute error is what matters).
    assert jnp.allclose(out.astype(jnp.float32), ref, atol=2e-2, rtol=2e-2)

    print("KERNEL_OK")
</pallas_src>

<mosaic_0001>
module attributes {stable_mosaic.version = 11 : i64} {
  func.func @gen_kernel(%arg0: i32, %arg1: memref<16x128xbf16, #tpu.memory_space<vmem>>, %arg2: memref<128x128xbf16, #tpu.memory_space<vmem>>, %arg3: memref<1x128xf32, #tpu.memory_space<vmem>>, %arg4: memref<128x256xbf16, #tpu.memory_space<vmem>>, %arg5: memref<1x256xf32, #tpu.memory_space<vmem>>, %arg6: memref<16x256xf32, #tpu.memory_space<vmem>>) attributes {dimension_semantics = [#tpu.dimension_semantics<parallel>], iteration_bounds = array<i64: 1>, scalar_prefetch = 0 : i64, scratch_operands = 0 : i64, tpu.core_type = #tpu.core_type<tc>, window_params = [{transform_indices = @transform_0, window_bounds = array<i64: 16, 128>}, {pipeline_mode = #tpu.pipeline_mode<synchronous>, transform_indices = @transform_1, window_bounds = array<i64: 128, 128>}, {pipeline_mode = #tpu.pipeline_mode<synchronous>, transform_indices = @transform_2, window_bounds = array<i64: 1, 128>}, {pipeline_mode = #tpu.pipeline_mode<synchronous>, transform_indices = @transform_3, window_bounds = array<i64: 128, 256>}, {pipeline_mode = #tpu.pipeline_mode<synchronous>, transform_indices = @transform_4, window_bounds = array<i64: 1, 256>}, {transform_indices = @transform_5, window_bounds = array<i64: 16, 256>}]} {
    %c0 = arith.constant 0 : index
    %c0_0 = arith.constant 0 : index
    %0 = vector.load %arg1[%c0, %c0_0] : memref<16x128xbf16, #tpu.memory_space<vmem>>, vector<16x128xbf16>
    %c0_1 = arith.constant 0 : index
    %c0_2 = arith.constant 0 : index
    %1 = vector.load %arg2[%c0_1, %c0_2] : memref<128x128xbf16, #tpu.memory_space<vmem>>, vector<128x128xbf16>
    %cst = arith.constant dense<0.000000e+00> : vector<16x128xf32>
    %2 = tpu.matmul %0, %1, %cst {dimension_numbers = #tpu.dot_dimension_numbers<[1], [0], [0], [1], [0, 0, 1, 1], [], []>} : vector<16x128xbf16>, vector<128x128xbf16>, vector<16x128xf32> -> vector<16x128xf32>
    %c0_3 = arith.constant 0 : index
    %c0_4 = arith.constant 0 : index
    %3 = vector.load %arg3[%c0_3, %c0_4] : memref<1x128xf32, #tpu.memory_space<vmem>>, vector<1x128xf32>
    %4 = vector.broadcast %3 : vector<1x128xf32> to vector<16x128xf32>
    %5 = arith.addf %2, %4 : vector<16x128xf32>
    %cst_5 = arith.constant 0.000000e+00 : f32
    %6 = vector.broadcast %cst_5 : f32 to vector<16x128xf32>
    %7 = arith.maximumf %5, %6 : vector<16x128xf32>
    %8 = arith.truncf %7 : vector<16x128xf32> to vector<16x128xbf16>
    %c0_6 = arith.constant 0 : index
    %c0_7 = arith.constant 0 : index
    %9 = vector.load %arg4[%c0_6, %c0_7] : memref<128x256xbf16, #tpu.memory_space<vmem>>, vector<128x256xbf16>
    %cst_8 = arith.constant dense<0.000000e+00> : vector<16x256xf32>
    %10 = tpu.matmul %8, %9, %cst_8 {dimension_numbers = #tpu.dot_dimension_numbers<[1], [0], [0], [1], [0, 0, 1, 1], [], []>} : vector<16x128xbf16>, vector<128x256xbf16>, vector<16x256xf32> -> vector<16x256xf32>
    %c0_9 = arith.constant 0 : index
    %c0_10 = arith.constant 0 : index
    %11 = vector.load %arg5[%c0_9, %c0_10] : memref<1x256xf32, #tpu.memory_space<vmem>>, vector<1x256xf32>
    %12 = vector.broadcast %11 : vector<1x256xf32> to vector<16x256xf32>
    %13 = arith.addf %10, %12 : vector<16x256xf32>
    %cst_11 = arith.constant 0.000000e+00 : f32
    %14 = vector.broadcast %cst_11 : f32 to vector<16x256xf32>
    %15 = arith.subf %14, %13 : vector<16x256xf32>
    %16 = math.exp %15 : vector<16x256xf32>
    %cst_12 = arith.constant 1.000000e+00 : f32
    %17 = vector.broadcast %cst_12 : f32 to vector<16x256xf32>
    %18 = arith.addf %17, %16 : vector<16x256xf32>
    %19 = tpu.reciprocal %18 {approx = true} : vector<16x256xf32> -> vector<16x256xf32>
    %c0_13 = arith.constant 0 : index
    %c0_14 = arith.constant 0 : index
    %20 = vector.load %arg6[%c0_13, %c0_14] : memref<16x256xf32, #tpu.memory_space<vmem>>, vector<16x256xf32>
    tpu.vector_store %arg6[%c0_13, %c0_14], %19 {strides = array<i32>} : memref<16x256xf32, #tpu.memory_space<vmem>>, vector<16x256xf32>,
    return
  }
  func.func @transform_0(%arg0: i32) -> (i32, i32) {
    %c0_i32 = arith.constant 0 : i32
    %c0_i32_0 = arith.constant 0 : i32
    return %arg0, %c0_i32 : i32, i32
  }
  func.func @transform_1(%arg0: i32) -> (i32, i32) {
    %c0_i32 = arith.constant 0 : i32
    %c0_i32_0 = arith.constant 0 : i32
    %c0_i32_1 = arith.constant 0 : i32
    return %c0_i32, %c0_i32_0 : i32, i32
  }
  func.func @transform_2(%arg0: i32) -> (i32, i32) {
    %c0_i32 = arith.constant 0 : i32
    %c0_i32_0 = arith.constant 0 : i32
    %c0_i32_1 = arith.constant 0 : i32
    return %c0_i32, %c0_i32_0 : i32, i32
  }
  func.func @transform_3(%arg0: i32) -> (i32, i32) {
    %c0_i32 = arith.constant 0 : i32
    %c0_i32_0 = arith.constant 0 : i32
    %c0_i32_1 = arith.constant 0 : i32
    return %c0_i32, %c0_i32_0 : i32, i32
  }
  func.func @transform_4(%arg0: i32) -> (i32, i32) {
    %c0_i32 = arith.constant 0 : i32
    %c0_i32_0 = arith.constant 0 : i32
    %c0_i32_1 = arith.constant 0 : i32
    return %c0_i32, %c0_i32_0 : i32, i32
  }
  func.func @transform_5(%arg0: i32) -> (i32, i32) {
    %c0_i32 = arith.constant 0 : i32
    %c0_i32_0 = arith.constant 0 : i32
    return %arg0, %c0_i32 : i32, i32
  }
}

</mosaic_0001>

<bundles_post_ra>
// kernel: gen_forward.1
= control target key start
LH: loop header
LB: loop body
LE: loop exit
PB: predicated region body
PF: predicated region fallthrough
CT: control target
= control target key end

     0   :  { %s622_s0 = inlined_call_operand.vmem [shape: bf16[16,128], index: 0, kind: input, shape index: {}]   ;;  %s623_s1 = inlined_call_operand.vmem [shape: bf16[128,128], index: 1, kind: input, shape index: {}]   ;;  %s624_s2 = inlined_call_operand.vmem [shape: f32[1,128], index: 2, kind: input, shape index: {}]   ;;  %s625_s3 = inlined_call_operand.vmem [shape: bf16[128,256], index: 3, kind: input, shape index: {}]   ;;  %s626_s4 = inlined_call_operand.vmem [shape: f32[1,256], index: 4, kind: input, shape index: {}]   ;;  %s627_s5 = inlined_call_operand.hbm [shape: f32[16,256], index: 5, kind: output, shape index: {}]  }
   0x1   :  { %v394_v0 = vld [vmem:[%s623_s1 + $0x38] sm:$0xff]  ;;  %v393_v1 = vld [vmem:[%s623_s1 + $0x30] sm:$0xff]  ;;  %v372_v7 = vld [vmem:[%s625_s3 + $0x60] sm:$0xf] }
   0x2   :  { %97 = vmatpush.bf16.msra.mxu0 %v394_v0  ;;  %v380_v2 = vld [vmem:[%s625_s3 + $0x70] sm:$0xf]  ;;  %v410_v3 = vld [vmem:[%s625_s3 + $0x74] sm:$0xf0]  ;;  %v409_v4 = vld [vmem:[%s625_s3 + $0x74] sm:$0xf] }
   0x3   :  { %v381_v5 = vor.u32 %v410_v3, %v380_v2  ;;  %v382_v6 = vld [vmem:[%s625_s3 + $0x78] sm:$0xf0]  ;;  %v408_v8 = vld [vmem:[%s625_s3 + $0x64] sm:$0xf0]  ;;  %v407_v10 = vld [vmem:[%s625_s3 + $0x64] sm:$0xf] }
   0x4   :  { %v385_v9 = vor.u32 %v409_v4, %v382_v6  ;;  %v374_v11 = vld [vmem:[%s625_s3 + $0x68] sm:$0xf0]  ;;  %v373_v13 = vor.u32 %v408_v8, %v372_v7  ;;  %v364_v15 = vld [vmem:[%s625_s3 + $0x50] sm:$0xf]  ;;  %v406_v16 = vld [vmem:[%s625_s3 + $0x54] sm:$0xf0] }
   0x5   :  { %v392_v12 = vld [vmem:[%s623_s1 + $0x28] sm:$0xff]  ;;  %216 = vmatpush.bf16.msra.mxu1 %v381_v5  ;;  %v377_v14 = vor.u32 %v407_v10, %v374_v11  ;;  %v405_v17 = vld [vmem:[%s625_s3 + $0x54] sm:$0xf]  ;;  %v366_v18 = vld [vmem:[%s625_s3 + $0x58] sm:$0xf0] }
   0x6   :  { %98 = vmatpush.bf16.msra.mxu0 %v393_v1  ;;  %230 = vmatpush.bf16.msra.mxu2 %v385_v9 }
   0x7   :  { %10 = vsyncpa [#allocation3], 0  ;;  %v391_v19 = vld [vmem:[%s623_s1 + $0x20] sm:$0xff]  ;;  %v365_v20 = vor.u32 %v406_v16, %v364_v15  ;;  %v369_v21 = vor.u32 %v405_v17, %v366_v18  ;;  %v404_v23 = vld [vmem:[%s625_s3 + $0x44] sm:$0xf0]  ;;  %s274_s26 = sshll.u32 %s627_s5, 4  ;;  %s275_s26 = int_to_ptr.hbm [resolvable:$true] %s274_s26 }
   0x8   :  { %v356_v22 = vld [vmem:[%s625_s3 + $0x40] sm:$0xf]  ;;  %v403_v24 = vld [vmem:[%s625_s3 + $0x44] sm:$0xf]  ;;  %v358_v25 = vld [vmem:[%s625_s3 + $0x48] sm:$0xf0] }
   0x9   :  { %217 = vmatpush.bf16.msra.mxu1 %v373_v13  ;;  %v390_v26 = vld [vmem:[%s623_s1 + $0x18] sm:$0xff]  ;;  %v357_v27 = vor.u32 %v404_v23, %v356_v22  ;;  %v361_v28 = vor.u32 %v403_v24, %v358_v25  ;;  %v389_v29 = vld [vmem:[%s623_s1 + $0x10] sm:$0xff]  ;;  %v388_v30 = vld [vmem:[%s623_s1 + $0x8] sm:$0xff]  ;;  %s458_s27 = smov 256   ;;  %s459_s28 = smov 16  }
   0xa   :  { %99 = vmatpush.bf16.msra.mxu0 %v392_v12  ;;  %231 = vmatpush.bf16.msra.mxu2 %v377_v14  ;;  %v387_v31 = vld [vmem:[%s623_s1] sm:$0xff]  ;;  %v348_v33 = vld [vmem:[%s625_s3 + $0x30] sm:$0xf]  ;;  %v402_v34 = vld [vmem:[%s625_s3 + $0x34] sm:$0xf0] }
   0xb   :  { %v386_v32 = vld [vmem:[%s622_s0] sm:$0xff]  ;;  %v401_v35 = vld [vmem:[%s625_s3 + $0x34] sm:$0xf]  ;;  %v349_v36 = vor.u32 %v402_v34, %v348_v33  ;;  %v350_v37 = vld [vmem:[%s625_s3 + $0x38] sm:$0xf0] }
   0xc   :  { %v353_v38 = vor.u32 %v401_v35, %v350_v37  ;;  %v340_v39 = vld [vmem:[%s625_s3 + $0x20] sm:$0xf]  ;;  %v400_v40 = vld [vmem:[%s625_s3 + $0x24] sm:$0xf0]  ;;  %v399_v41 = vld [vmem:[%s625_s3 + $0x24] sm:$0xf] }
   0xd   :  { %218 = vmatpush.bf16.msra.mxu1 %v365_v20  ;;  %v341_v42 = vor.u32 %v400_v40, %v340_v39  ;;  %v342_v43 = vld [vmem:[%s625_s3 + $0x28] sm:$0xf0]  ;;  %v332_v45 = vld [vmem:[%s625_s3 + $0x10] sm:$0xf]  ;;  %v398_v46 = vld [vmem:[%s625_s3 + $0x14] sm:$0xf0] }
   0xe   :  { %100 = vmatpush.bf16.msra.mxu0 %v391_v19  ;;  %232 = vmatpush.bf16.msra.mxu2 %v369_v21  ;;  %v345_v44 = vor.u32 %v399_v41, %v342_v43  ;;  %v397_v47 = vld [vmem:[%s625_s3 + $0x14] sm:$0xf]  ;;  %v333_v48 = vor.u32 %v398_v46, %v332_v45  ;;  %v334_v49 = vld [vmem:[%s625_s3 + $0x18] sm:$0xf0]  ;;  %v324_v51 = vld [vmem:[%s625_s3] sm:$0xf] }
   0xf   :  { %v337_v50 = vor.u32 %v397_v47, %v334_v49  ;;  %v396_v52 = vld [vmem:[%s625_s3 + $0x4] sm:$0xf0]  ;;  %v395_v53 = vld [vmem:[%s625_s3 + $0x4] sm:$0xf]  ;;  %v326_v55 = vld [vmem:[%s625_s3 + $0x8] sm:$0xf0] }
  0x10   :  { %v325_v54 = vor.u32 %v396_v52, %v324_v51  ;;  %v329_v56 = vor.u32 %v395_v53, %v326_v55  ;;  %v414_v58 = vld [vmem:[%s624_s2] ss:$0 sm:$0xff]  ;;  %s457_s2 = smov [#allocation2]  }
  0x11   :  { %219 = vmatpush.bf16.msra.mxu1 %v357_v27  ;;  %v130_v1 = vld [vmem:[%s626_s4] sm:$0x3]  ;;  %s272_s3 = sshll.u32 %s457_s2, 4  ;;  %s273_s3 = int_to_ptr.vmem [resolvable:$true] %s272_s3 }
  0x12   :  { %101 = vmatpush.bf16.msra.mxu0 %v390_v26  ;;  %233 = vmatpush.bf16.msra.mxu2 %v361_v28  ;;  %v132_v2 = vperm.slane %v130_v1, 0  ;;  %v133_v6 = vperm.slane %v130_v1, 1 }
  0x15   :  { %220 = vmatpush.bf16.msra.mxu1 %v349_v36 }
  0x16   :  { %102 = vmatpush.bf16.msra.mxu0 %v389_v29  ;;  %234 = vmatpush.bf16.msra.mxu2 %v353_v38 }
  0x19   :  { %221 = vmatpush.bf16.msra.mxu1 %v341_v42 }
  0x1a   :  { %103 = vmatpush.bf16.msra.mxu0 %v388_v30  ;;  %235 = vmatpush.bf16.msra.mxu2 %v345_v44 }
  0x1d   :  { %222 = vmatpush.bf16.msra.mxu1 %v333_v48 }
  0x1e   :  { %104 = vmatpush.bf16.msra.mxu0 %v387_v31  ;;  %236 = vmatpush.bf16.msra.mxu2 %v337_v50 }
  0x21   :  { %105 = vmatmul.bf16.vlgmr.msra.gmra.mxu0 %v386_v32  ;;  %223 = vmatpush.bf16.msra.mxu1 %v325_v54 }
  0x22   :  { %237 = vmatpush.bf16.msra.mxu2 %v329_v56 }
  0x9e   :  { %v106_v57 = vpop.f32.mrf.mxu0 }
  0x9f   :  { %v107_v59 = vadd.f32 %v414_v58, %v106_v57 }
  0xa1   :  { %v111_v62 = vmax.f32 %v107_v59, 0.0 }
  0xa6   :  { %v108_v60 = vpop.f32.mrf.mxu0 }
  0xa7   :  { %v109_v61 = vadd.f32 %v414_v58, %v108_v60 }
  0xa9   :  { %v112_v63 = vmax.f32 %v109_v61, 0.0 }
  0xab   :  { %v113_v0 = vpack.c.bf16 %v112_v63, %v111_v62 }
  0xad   :  { %224 = vmatmul.bf16.vlgmr.msra.gmra.mxu1 %v113_v0  ;;  %238 = vmatmul.bf16.vlgmr.msra.gmra.mxu2 %v113_v0 }
 0x12a   :  { %v225_v3 = vpop.f32.mrf.mxu1 }
 0x12b   :  { %v226_v4 = vadd.f32 %v225_v3, %v132_v2 }
 0x12d   :  { %v244_v5 = vsub.f32 0.0, %v226_v4 }
 0x12f   :  { %v248_v7 = vmul.f32 1.442695, %v244_v5 }
 0x130   :  { %v239_v8 = vpop.f32.mrf.mxu2 }
 0x131   :  { %415 = vpow2.f32 %v248_v7  ;;  %v240_v9 = vadd.f32 %v239_v8, %v133_v6 }
 0x132   :  { %v227_v10 = vpop.f32.mrf.mxu1 }
 0x133   :  { %v245_v11 = vsub.f32 0.0, %v240_v9  ;;  %v228_v12 = vadd.f32 %v227_v10, %v132_v2 }
 0x135   :  { %v250_v13 = vmul.f32 1.442695, %v245_v11  ;;  %v246_v14 = vsub.f32 0.0, %v228_v12 }
 0x137   :  { %v416_v15 = vpop.eup %415  ;;  %417 = vpow2.f32 %v250_v13  ;;  %v252_v16 = vmul.f32 1.442695, %v246_v14 }
 0x138   :  { %v256_v17 = vadd.f32 1.0, %v416_v15  ;;  %v241_v18 = vpop.f32.mrf.mxu2 }
 0x139   :  { %419 = vpow2.f32 %v252_v16  ;;  %v242_v19 = vadd.f32 %v241_v18, %v133_v6 }
 0x13a   :  { %421 = vrcp.f32 %v256_v17 }
 0x13b   :  { %v247_v20 = vsub.f32 0.0, %v242_v19 }
 0x13d   :  { %v418_v21 = vpop.eup %417  ;;  %v254_v22 = vmul.f32 1.442695, %v247_v20 }
 0x13e   :  { %v257_v23 = vadd.f32 1.0, %v418_v21 }
 0x13f   :  { %v420_v24 = vpop.eup %419  ;;  %423 = vpow2.f32 %v254_v22 }
 0x140   :  { %v422_v25 = vpop.eup %421  ;;  %425 = vrcp.f32 %v257_v23  ;;  %v258_v26 = vadd.f32 1.0, %v420_v24 }
 0x141   :  { %264 = vst [vmem:[#allocation2] sm:$0xff] %v422_v25 }
 0x142   :  { %427 = vrcp.f32 %v258_v26 }
 0x145   :  { %v424_v27 = vpop.eup %423 }
 0x146   :  { %v426_v28 = vpop.eup %425  ;;  %v259_v29 = vadd.f32 1.0, %v424_v27 }
 0x147   :  { %265 = vst [vmem:[#allocation2 + $0x8] sm:$0xff] %v426_v28 }
 0x148   :  { %v428_v30 = vpop.eup %427  ;;  %429 = vrcp.f32 %v259_v29 }
 0x149   :  { %266 = vst [vmem:[#allocation2 + $0x10] sm:$0xff] %v428_v30 }
 0x14e   :  { %v430_v31 = vpop.eup %429 }
 0x14f   :  { %267 = vst [vmem:[#allocation2 + $0x18] sm:$0xff] %v430_v31 }
 0x150   :  { %280 = dma.vmem_to_hbm [thread:$0]  %s273_s3, 512, %s275_s26, [#allocation3], %s458_s27, %s458_s27, %s459_s28  }
 0x151   :  { %455 = dma.done.wait [#allocation3], 512  }
 0x152   :  { %456 = vsyncadd [#allocation3], 4294966784 }
 0x153   :  { %285 = vsyncpa [#allocation3], 1 }

</bundles_post_ra>
